<compile_context>
chip_gen: v6e
topology: v6e:2x2x1
jax: 0.10.0
libtpu: 0.0.40
codegen_flags: <defaults>
</compile_context>

<pallas_src>
import jax
import jax.numpy as jnp
from jax.experimental import pallas as pl
from jax.experimental.pallas import tpu as pltpu

HIDDEN1 = 512
HIDDEN2 = 256
OUT_PAD = 128  # lane-dense padded width of the final layer


def _round_up(x, m):
    return (x + m - 1) // m * m


def dqn_forward_kernel(x_ref, w1_ref, w2_ref, w3_ref, bias_ref, o_ref):
    # Static slices of the fused bias constant (zero runtime cost).
    b1 = bias_ref[:, :HIDDEN1]
    b2 = bias_ref[:, HIDDEN1:HIDDEN1 + HIDDEN2]
    b3 = bias_ref[:, HIDDEN1 + HIDDEN2:]

    # Layer 1: Linear(state_size, 512) + ReLU.  bf16 x bf16 -> f32 acc,
    # bias+ReLU in f32, immediately downcast so only bf16 stays live.
    x = x_ref[...].astype(jnp.bfloat16)
    h1 = jnp.maximum(
        jnp.dot(x, w1_ref[...], preferred_element_type=jnp.float32) + b1, 0.0
    ).astype(jnp.bfloat16)
    # Dropout(0.2) -> identity in eval mode.

    # Layer 2: Linear(512, 256) + ReLU.
    h2 = jnp.maximum(
        jnp.dot(h1, w2_ref[...], preferred_element_type=jnp.float32) + b2, 0.0
    ).astype(jnp.bfloat16)
    # Dropout(0.2) -> identity in eval mode.

    # Layer 3: Linear(256, action_size), lane-padded to OUT_PAD; bf16 store.
    o_ref[...] = (
        jnp.dot(h2, w3_ref[...], preferred_element_type=jnp.float32) + b3
    ).astype(o_ref.dtype)


def dqn_forward(x, w1, w2, w3p, bias, action_size, *, tile_b=512):
    """Fused MLP forward.

    x:    [B, state_size] f32
    w1:   [state_size, 512] bf16
    w2:   [512, 256]        bf16
    w3p:  [256, OUT_PAD]    bf16 (lane-padded final layer)
    bias: [1, 512+256+OUT_PAD] f32 (b1|b2|b3p concatenated)
    Returns [B, action_size] f32.
    """
    B, S = x.shape
    n_pad = w3p.shape[1]

    # Tile policy (see header): one grid step for small B, >=2 tiles of up to
    # `tile_b` rows for bulk evaluation.  16-row granularity keeps both f32
    # inputs and the bf16 output on native sublane tiling.
    if B < 256:
        tb = _round_up(B, 16)
    else:
        tb = min(tile_b, _round_up((B + 1) // 2, 16))
    Bp = _round_up(B, tb)
    if Bp != B:
        x = jnp.pad(x, ((0, Bp - B), (0, 0)))

    grid = (Bp // tb,)
    const = lambda shape: pl.BlockSpec(shape, lambda i: (0,) * len(shape))

    out = pl.pallas_call(
        dqn_forward_kernel,
        out_shape=jax.ShapeDtypeStruct((Bp, n_pad), jnp.bfloat16),
        grid=grid,
        in_specs=[
            pl.BlockSpec((tb, S), lambda i: (i, 0)),   # x: pipelined over batch
            const(w1.shape),                            # weights: VMEM-resident
            const(w2.shape),
            const(w3p.shape),
            const(bias.shape),                          # fused bias constant
        ],
        out_specs=pl.BlockSpec((tb, n_pad), lambda i: (i, 0)),
        compiler_params=pltpu.CompilerParams(
            dimension_semantics=("parallel",),
            vmem_limit_bytes=16 << 20,
        ),
    )(x, w1, w2, w3p, bias)

    return out[:B, :action_size].astype(jnp.float32)


def init_params(key, state_size, action_size):
    """PyTorch-Linear-style init: U(-1/sqrt(fan_in), 1/sqrt(fan_in)).

    Weights are returned as bf16 [in, out]; biases are fused into a single
    f32 [1, 512+256+OUT_PAD] row.  The last layer is zero-padded to OUT_PAD
    lanes (padded Q-values are sliced off in the wrapper before any argmax).
    """
    ks = jax.random.split(key, 6)

    def linear(kw, kb, fan_in, fan_out):
        bound = 1.0 / jnp.sqrt(fan_in)
        w = jax.random.uniform(kw, (fan_in, fan_out), jnp.float32, -bound, bound)
        b = jax.random.uniform(kb, (fan_out,), jnp.float32, -bound, bound)
        return w.astype(jnp.bfloat16), b

    w1, b1 = linear(ks[0], ks[1], state_size, HIDDEN1)
    w2, b2 = linear(ks[2], ks[3], HIDDEN1, HIDDEN2)
    w3, b3 = linear(ks[4], ks[5], HIDDEN2, action_size)

    w3p = jnp.zeros((HIDDEN2, OUT_PAD), jnp.bfloat16).at[:, :action_size].set(w3)
    b3p = jnp.zeros((OUT_PAD,), jnp.float32).at[:action_size].set(b3)

    bias = jnp.concatenate([b1, b2, b3p])[None, :]   # [1, 512+256+OUT_PAD] f32
    return w1, w2, w3p, bias


if __name__ == "__main__":
    # Small, module-consistent shapes (batch matches the agent's replay
    # batch_size=64; hidden sizes are fixed by the nn.Sequential definition).
    batch = 64
    state_size = 16
    action_size = 8

    key = jax.random.PRNGKey(0)
    kx, kp = jax.random.split(key)

    x = jax.random.normal(kx, (batch, state_size), dtype=jnp.float32)
    w1, w2, w3p, bias = init_params(kp, state_size, action_size)

    out = dqn_forward(x, w1, w2, w3p, bias, action_size)
    out = jax.block_until_ready(out)

    # Reference in plain JAX with identical precision choices (bf16 weights &
    # inter-layer activations, f32 accumulation and bias+ReLU, bf16 output,
    # dropout = identity at eval).
    def ref(x):
        b1 = bias[:, :HIDDEN1]
        b2 = bias[:, HIDDEN1:HIDDEN1 + HIDDEN2]
        b3 = bias[:, HIDDEN1 + HIDDEN2:]
        h1 = jnp.maximum(
            jnp.dot(x.astype(jnp.bfloat16), w1,
                    preferred_element_type=jnp.float32) + b1, 0.0
        ).astype(jnp.bfloat16)
        h2 = jnp.maximum(
            jnp.dot(h1, w2, preferred_element_type=jnp.float32) + b2, 0.0
        ).astype(jnp.bfloat16)
        o = (jnp.dot(h2, w3p, preferred_element_type=jnp.float32) + b3
             ).astype(jnp.bfloat16)
        return o[:, :action_size].astype(jnp.float32)

    ref_out = ref(x)
    assert out.shape == (batch, action_size)
    assert jnp.allclose(out, ref_out, atol=2e-2, rtol=2e-2), "mismatch vs ref"

    print("KERNEL_OK")
</pallas_src>

<mosaic_0001>
module attributes {stable_mosaic.version = 11 : i64} {
  func.func @dqn_forward_kernel(%arg0: i32, %arg1: memref<64x16xf32, #tpu.memory_space<vmem>>, %arg2: memref<16x512xbf16, #tpu.memory_space<vmem>>, %arg3: memref<512x256xbf16, #tpu.memory_space<vmem>>, %arg4: memref<256x128xbf16, #tpu.memory_space<vmem>>, %arg5: memref<1x896xf32, #tpu.memory_space<vmem>>, %arg6: memref<64x128xbf16, #tpu.memory_space<vmem>>) attributes {dimension_semantics = [#tpu.dimension_semantics<parallel>], iteration_bounds = array<i64: 1>, scalar_prefetch = 0 : i64, scratch_operands = 0 : i64, tpu.core_type = #tpu.core_type<tc>, window_params = [{transform_indices = @transform_0, window_bounds = array<i64: 64, 16>}, {pipeline_mode = #tpu.pipeline_mode<synchronous>, transform_indices = @transform_1, window_bounds = array<i64: 16, 512>}, {pipeline_mode = #tpu.pipeline_mode<synchronous>, transform_indices = @transform_2, window_bounds = array<i64: 512, 256>}, {pipeline_mode = #tpu.pipeline_mode<synchronous>, transform_indices = @transform_3, window_bounds = array<i64: 256, 128>}, {pipeline_mode = #tpu.pipeline_mode<synchronous>, transform_indices = @transform_4, window_bounds = array<i64: 1, 896>}, {transform_indices = @transform_5, window_bounds = array<i64: 64, 128>}]} {
    %c0 = arith.constant 0 : index
    %c0_0 = arith.constant 0 : index
    %0 = vector.load %arg5[%c0, %c0_0] : memref<1x896xf32, #tpu.memory_space<vmem>>, vector<1x512xf32>
    %c0_1 = arith.constant 0 : index
    %c512 = arith.constant 512 : index
    %1 = vector.load %arg5[%c0_1, %c512] : memref<1x896xf32, #tpu.memory_space<vmem>>, vector<1x256xf32>
    %c0_2 = arith.constant 0 : index
    %c768 = arith.constant 768 : index
    %2 = vector.load %arg5[%c0_2, %c768] : memref<1x896xf32, #tpu.memory_space<vmem>>, vector<1x128xf32>
    %c0_3 = arith.constant 0 : index
    %c0_4 = arith.constant 0 : index
    %3 = vector.load %arg1[%c0_3, %c0_4] : memref<64x16xf32, #tpu.memory_space<vmem>>, vector<64x16xf32>
    %4 = arith.truncf %3 : vector<64x16xf32> to vector<64x16xbf16>
    %c0_5 = arith.constant 0 : index
    %c0_6 = arith.constant 0 : index
    %5 = vector.load %arg2[%c0_5, %c0_6] : memref<16x512xbf16, #tpu.memory_space<vmem>>, vector<16x512xbf16>
    %cst = arith.constant dense<0.000000e+00> : vector<64x512xf32>
    %6 = tpu.matmul %4, %5, %cst {dimension_numbers = #tpu.dot_dimension_numbers<[1], [0], [0], [1], [0, 0, 1, 1], [], []>} : vector<64x16xbf16>, vector<16x512xbf16>, vector<64x512xf32> -> vector<64x512xf32>
    %7 = vector.broadcast %0 : vector<1x512xf32> to vector<64x512xf32>
    %8 = arith.addf %6, %7 : vector<64x512xf32>
    %cst_7 = arith.constant 0.000000e+00 : f32
    %9 = vector.broadcast %cst_7 : f32 to vector<64x512xf32>
    %10 = arith.maximumf %8, %9 : vector<64x512xf32>
    %11 = arith.truncf %10 : vector<64x512xf32> to vector<64x512xbf16>
    %c0_8 = arith.constant 0 : index
    %c0_9 = arith.constant 0 : index
    %12 = vector.load %arg3[%c0_8, %c0_9] : memref<512x256xbf16, #tpu.memory_space<vmem>>, vector<512x256xbf16>
    %cst_10 = arith.constant dense<0.000000e+00> : vector<64x256xf32>
    %13 = tpu.matmul %11, %12, %cst_10 {dimension_numbers = #tpu.dot_dimension_numbers<[1], [0], [0], [1], [0, 0, 1, 1], [], []>} : vector<64x512xbf16>, vector<512x256xbf16>, vector<64x256xf32> -> vector<64x256xf32>
    %14 = vector.broadcast %1 : vector<1x256xf32> to vector<64x256xf32>
    %15 = arith.addf %13, %14 : vector<64x256xf32>
    %cst_11 = arith.constant 0.000000e+00 : f32
    %16 = vector.broadcast %cst_11 : f32 to vector<64x256xf32>
    %17 = arith.maximumf %15, %16 : vector<64x256xf32>
    %18 = arith.truncf %17 : vector<64x256xf32> to vector<64x256xbf16>
    %c0_12 = arith.constant 0 : index
    %c0_13 = arith.constant 0 : index
    %19 = vector.load %arg4[%c0_12, %c0_13] : memref<256x128xbf16, #tpu.memory_space<vmem>>, vector<256x128xbf16>
    %cst_14 = arith.constant dense<0.000000e+00> : vector<64x128xf32>
    %20 = tpu.matmul %18, %19, %cst_14 {dimension_numbers = #tpu.dot_dimension_numbers<[1], [0], [0], [1], [0, 0, 1, 1], [], []>} : vector<64x256xbf16>, vector<256x128xbf16>, vector<64x128xf32> -> vector<64x128xf32>
    %21 = vector.broadcast %2 : vector<1x128xf32> to vector<64x128xf32>
    %22 = arith.addf %20, %21 : vector<64x128xf32>
    %23 = arith.truncf %22 : vector<64x128xf32> to vector<64x128xbf16>
    %c0_15 = arith.constant 0 : index
    %c0_16 = arith.constant 0 : index
    %24 = vector.load %arg6[%c0_15, %c0_16] : memref<64x128xbf16, #tpu.memory_space<vmem>>, vector<64x128xbf16>
    tpu.vector_store %arg6[%c0_15, %c0_16], %23 {strides = array<i32>} : memref<64x128xbf16, #tpu.memory_space<vmem>>, vector<64x128xbf16>,
    return
  }
  func.func @transform_0(%arg0: i32) -> (i32, i32) {
    %c0_i32 = arith.constant 0 : i32
    %c0_i32_0 = arith.constant 0 : i32
    return %arg0, %c0_i32 : i32, i32
  }
  func.func @transform_1(%arg0: i32) -> (i32, i32) {
    %c0_i32 = arith.constant 0 : i32
    %c0_i32_0 = arith.constant 0 : i32
    %c0_i32_1 = arith.constant 0 : i32
    return %c0_i32, %c0_i32_0 : i32, i32
  }
  func.func @transform_2(%arg0: i32) -> (i32, i32) {
    %c0_i32 = arith.constant 0 : i32
    %c0_i32_0 = arith.constant 0 : i32
    %c0_i32_1 = arith.constant 0 : i32
    return %c0_i32, %c0_i32_0 : i32, i32
  }
  func.func @transform_3(%arg0: i32) -> (i32, i32) {
    %c0_i32 = arith.constant 0 : i32
    %c0_i32_0 = arith.constant 0 : i32
    %c0_i32_1 = arith.constant 0 : i32
    return %c0_i32, %c0_i32_0 : i32, i32
  }
  func.func @transform_4(%arg0: i32) -> (i32, i32) {
    %c0_i32 = arith.constant 0 : i32
    %c0_i32_0 = arith.constant 0 : i32
    %c0_i32_1 = arith.constant 0 : i32
    return %c0_i32, %c0_i32_0 : i32, i32
  }
  func.func @transform_5(%arg0: i32) -> (i32, i32) {
    %c0_i32 = arith.constant 0 : i32
    %c0_i32_0 = arith.constant 0 : i32
    return %arg0, %c0_i32 : i32, i32
  }
}

</mosaic_0001>

<bundles_post_ra>
// kernel: tpu_custom_call.1
= control target key start
LH: loop header
LB: loop body
LE: loop exit
PB: predicated region body
PF: predicated region fallthrough
CT: control target
= control target key end

     0   :  { %10 = vsyncpa [#allocation3], 0  ;;  %s1707_s0 = inlined_call_operand.vmem [shape: f32[64,16], index: 0, kind: input, shape index: {}]   ;;  %s1708_s1 = inlined_call_operand.vmem [shape: bf16[16,512], index: 1, kind: input, shape index: {}]   ;;  %s1709_s2 = inlined_call_operand.hbm [shape: bf16[512,256], index: 2, kind: input, shape index: {}]   ;;  %s1710_s3 = inlined_call_operand.hbm [shape: bf16[256,128], index: 3, kind: input, shape index: {}]   ;;  %s1711_s4 = inlined_call_operand.vmem [shape: f32[1,896], index: 4, kind: input, shape index: {}]   ;;  %s1712_s5 = inlined_call_operand.hbm [shape: bf16[64,128], index: 5, kind: output, shape index: {}]  }
   0x1   :  { %11 = vsyncpa [#allocation6], 0 }
   0x2   :  { %12 = vsyncpa [#allocation4], 0  ;;  %s1519_s18 = smov [#allocation2]  }
   0x3   :  { %s22_s19 = sshll.u32 %s1519_s18, 4  ;;  %s23_s19 = int_to_ptr.vmem [resolvable:$true] %s22_s19 }
   0x4   :  { %s1461_s20 = scalar_lea.vmem %s23_s19, 8192  ;;  %p1466_p1 = scmp.lt.s32.totalorder %s23_s19, %s23_s19 }
   0x5   :  { %p1462_p0 = scmp.ne.s32.totalorder %s23_s19, %s1461_s20  ;;  %p1467_p2 = scmp.lt.s32.totalorder %s1461_s20, %s1461_s20 }
   0x7   :  { %p1468_p3 = por %p1467_p2, %p1466_p1 }
   0x9   :  { %p1469_p4 = pnand %p1468_p3, %p1462_p0 }
   0xb   :  { %1472 = shalt.err (!%p1469_p4)
}
   0xc   :  { %s1520_s21 = smov 128   ;;  %s1521_s22 = smov 8  }
   0xd   :  { %28 = dma.hbm_to_vmem [thread:$0]  %s1709_s2, 8192, %s23_s19, [#allocation3], %s1520_s21, %s1520_s21, %s1521_s22  }
   0xe   :  { %s1522_s25 = smov [#allocation5]  }
   0xf   :  { %s34_s26 = sshll.u32 %s1522_s25, 4  ;;  %s35_s26 = int_to_ptr.vmem [resolvable:$true] %s34_s26 }
  0x10   :  { %s1481_s27 = scalar_lea.vmem %s35_s26, 2048  ;;  %p1486_p6 = scmp.lt.s32.totalorder %s35_s26, %s35_s26 }
  0x11   :  { %p1482_p5 = scmp.ne.s32.totalorder %s35_s26, %s1481_s27  ;;  %p1487_p7 = scmp.lt.s32.totalorder %s1481_s27, %s1481_s27 }
  0x13   :  { %p1488_p8 = por %p1487_p7, %p1486_p6 }
  0x15   :  { %p1489_p9 = pnand %p1488_p8, %p1482_p5 }
  0x17   :  { %1492 = shalt.err (!%p1489_p9)
}
  0x18   :  { %s1523_s28 = smov 64   ;;  %s1524_s29 = smov 4  }
  0x19   :  { %40 = dma.hbm_to_vmem [thread:$0]  %s1710_s3, 2048, %s35_s26, [#allocation6], %s1523_s28, %s1523_s28, %s1524_s29  }
  0x1a   :  { %1513 = dma.done.wait [#allocation3], 8192  }
  0x1b   :  { %1514 = vsyncadd [#allocation3], 4294959104 }
  0x1c   :  { %1515 = dma.done.wait [#allocation6], 2048  }
  0x1d   :  { %1516 = vsyncadd [#allocation6], 4294965248  ;;  %v1525_v0 = vmov 0   ;;  %v1335_v1 = vld [vmem:[%s1708_s1 + $0x4] ss:$16 sps:$4 sm:$0xff]   ;;  %v54_v6 = vld [vmem:[%s1707_s0 + $0x8] sm:$0xff] }
  0x1e   :  { %155 = vmatprep.mubr.bf16.mxu0 %v1525_v0  ;;  %228 = vmatprep.mubr.bf16.mxu1 %v1525_v0  ;;  %v1337_v2 = vld [vmem:[%s1708_s1 + $0xc] ss:$16 sps:$4 sm:$0xff]   ;;  %v1339_v3 = vld [vmem:[%s1708_s1] ss:$16 sps:$4 sm:$0xff]   ;;  %v1340_v4 = vld [vmem:[%s1708_s1 + $0x8] ss:$16 sps:$4 sm:$0xff]  }
  0x1f   :  { %137 = vmatprep.subr.bf16.mxu0 %v1335_v1  ;;  %v53_v5 = vld [vmem:[%s1707_s0] sm:$0xff]  ;;  %210 = vmatprep.subr.bf16.mxu1 %v1337_v2  ;;  %vm110_vm0 = vcmask 130048   ;;  %v55_v8 = vld [vmem:[%s1707_s0 + $0x10] sm:$0xff]  ;;  %v56_v9 = vld [vmem:[%s1707_s0 + $0x18] sm:$0xff] }
  0x20   :  { %138 = vmatpush1.bf16.msra.mxu0 %v1339_v3  ;;  %211 = vmatpush1.bf16.msra.mxu1 %v1340_v4  ;;  %v61_v7 = vpack.c.bf16 %v54_v6, %v53_v5  ;;  %v1341_v10 = vld [vmem:[#allocation2 + $0x70] ss:$8 sps:$4 sm:$0xff]   ;;  %v1343_v11 = vld [vmem:[#allocation2 + $0x74] ss:$8 sps:$4 sm:$0xff]   ;;  %v1347_v14 = vld [vmem:[#allocation2 + $0x60] ss:$8 sps:$4 sm:$0xff]   ;;  %v62_v18 = vpack.c.bf16 %v56_v9, %v55_v8 }
  0x21   :  { %v1344_v12 = vld [vmem:[#allocation2 + $0x170] ss:$8 sps:$4 sm:$0xff]   ;;  %v1346_v13 = vld [vmem:[#allocation2 + $0x174] ss:$8 sps:$4 sm:$0xff]   ;;  %712 = vmatprep.subr.bf16.mxu0 %v1343_v11  ;;  %v1349_v15 = vld [vmem:[#allocation2 + $0x64] ss:$8 sps:$4 sm:$0xff]  }
  0x22   :  { %785 = vmatprep.subr.bf16.mxu1 %v1346_v13  ;;  %v1350_v16 = vld [vmem:[#allocation2 + $0x160] ss:$8 sps:$4 sm:$0xff]   ;;  %v1352_v17 = vld [vmem:[#allocation2 + $0x164] ss:$8 sps:$4 sm:$0xff]   ;;  %v1355_v19 = vld [vmem:[#allocation2 + $0x54] ss:$8 sps:$4 sm:$0xff]  }
  0x23   :  { %1143 = vmatmul.mubr.msk.bf16.vlgmr.msra.gmra.mxu0 %vm110_vm0, %v61_v7  ;;  %1147 = vmatmul.mubr.msk.bf16.vlgmr.msra.gmra.mxu1 %vm110_vm0, %v61_v7  ;;  %v1358_v20 = vld [vmem:[#allocation2 + $0x154] ss:$8 sps:$4 sm:$0xff]   ;;  %v57_v21 = vld [vmem:[%s1707_s0 + $0x20] sm:$0xff]  ;;  %v1353_v22 = vld [vmem:[#allocation2 + $0x50] ss:$8 sps:$4 sm:$0xff]  }
  0x24   :  { %165 = vmatprep.mubr.bf16.mxu0 %v1525_v0  ;;  %238 = vmatprep.mubr.bf16.mxu1 %v1525_v0  ;;  %v1356_v23 = vld [vmem:[#allocation2 + $0x150] ss:$8 sps:$4 sm:$0xff]   ;;  %v1361_v24 = vld [vmem:[#allocation2 + $0x44] ss:$8 sps:$4 sm:$0xff]   ;;  %v1359_v27 = vld [vmem:[#allocation2 + $0x40] ss:$8 sps:$4 sm:$0xff]  }
  0x25   :  { %713 = vmatpush1.bf16.msra.mxu0 %v1341_v10  ;;  %786 = vmatpush1.bf16.msra.mxu1 %v1344_v12  ;;  %v1364_v25 = vld [vmem:[#allocation2 + $0x144] ss:$8 sps:$4 sm:$0xff]   ;;  %v1362_v28 = vld [vmem:[#allocation2 + $0x140] ss:$8 sps:$4 sm:$0xff]   ;;  %v1367_v30 = vld [vmem:[#allocation2 + $0x34] ss:$8 sps:$4 sm:$0xff]  }
  0x26   :  { %714 = vmatprep.subr.bf16.mxu0 %v1349_v15  ;;  %787 = vmatprep.subr.bf16.mxu1 %v1352_v17  ;;  %v58_v26 = vld [vmem:[%s1707_s0 + $0x28] sm:$0xff]  ;;  %v1370_v31 = vld [vmem:[#allocation2 + $0x134] ss:$8 sps:$4 sm:$0xff]   ;;  %v1365_v33 = vld [vmem:[#allocation2 + $0x30] ss:$8 sps:$4 sm:$0xff]  }
  0x27   :  { %v63_v29 = vpack.c.bf16 %v58_v26, %v57_v21  ;;  %v59_v32 = vld [vmem:[%s1707_s0 + $0x30] sm:$0xff]  ;;  %v1373_v35 = vld [vmem:[#allocation2 + $0x24] ss:$8 sps:$4 sm:$0xff]   ;;  %v60_v37 = vld [vmem:[%s1707_s0 + $0x38] sm:$0xff] }
  0x28   :  { %v1368_v34 = vld [vmem:[#allocation2 + $0x130] ss:$8 sps:$4 sm:$0xff]   ;;  %v1376_v36 = vld [vmem:[#allocation2 + $0x124] ss:$8 sps:$4 sm:$0xff]   ;;  %v1371_v38 = vld [vmem:[#allocation2 + $0x20] ss:$8 sps:$4 sm:$0xff]   ;;  %v64_v40 = vpack.c.bf16 %v60_v37, %v59_v32 }
  0x29   :  { %715 = vmatpush1.bf16.msra.mxu0 %v1347_v14  ;;  %788 = vmatpush1.bf16.msra.mxu1 %v1350_v16  ;;  %v1374_v39 = vld [vmem:[#allocation2 + $0x120] ss:$8 sps:$4 sm:$0xff]   ;;  %v1379_v41 = vld [vmem:[#allocation2 + $0x14] ss:$8 sps:$4 sm:$0xff]   ;;  %v1377_v43 = vld [vmem:[#allocation2 + $0x10] ss:$8 sps:$4 sm:$0xff]  }
  0x2a   :  { %716 = vmatprep.subr.bf16.mxu0 %v1355_v19  ;;  %789 = vmatprep.subr.bf16.mxu1 %v1358_v20  ;;  %v1382_v42 = vld [vmem:[#allocation2 + $0x114] ss:$8 sps:$4 sm:$0xff]   ;;  %v1380_v44 = vld [vmem:[#allocation2 + $0x110] ss:$8 sps:$4 sm:$0xff]   ;;  %v1385_v45 = vld [vmem:[#allocation2 + $0x4] ss:$8 sps:$4 sm:$0xff]  }
  0x2b   :  { %1144 = vmatmul.mubr.msk.bf16.gmra.mxu0 %vm110_vm0, %v62_v18  ;;  %1148 = vmatmul.mubr.msk.bf16.gmra.mxu1 %vm110_vm0, %v62_v18  ;;  %v1388_v46 = vld [vmem:[#allocation2 + $0x104] ss:$8 sps:$4 sm:$0xff]   ;;  %v1383_v47 = vld [vmem:[#allocation2] ss:$8 sps:$4 sm:$0xff]   ;;  %v1391_v49 = vld [vmem:[#allocation2 + $0xf4] ss:$8 sps:$4 sm:$0xff]   ;;  %v70_v18 = vlaneseq }
  0x2c   :  { %175 = vmatprep.mubr.bf16.mxu0 %v1525_v0  ;;  %248 = vmatprep.mubr.bf16.mxu1 %v1525_v0  ;;  %v1386_v48 = vld [vmem:[#allocation2 + $0x100] ss:$8 sps:$4 sm:$0xff]   ;;  %v1394_v50 = vld [vmem:[#allocation2 + $0x1f4] ss:$8 sps:$4 sm:$0xff]   ;;  %v1389_v51 = vld [vmem:[#allocation2 + $0xf0] ss:$8 sps:$4 sm:$0xff]  }
  0x2d   :  { %717 = vmatpush1.bf16.msra.mxu0 %v1353_v22  ;;  %790 = vmatpush1.bf16.msra.mxu1 %v1356_v23  ;;  %v1392_v52 = vld [vmem:[#allocation2 + $0x1f0] ss:$8 sps:$4 sm:$0xff]   ;;  %v1397_v53 = vld [vmem:[#allocation2 + $0xe4] ss:$8 sps:$4 sm:$0xff]   ;;  %v1395_v55 = vld [vmem:[#allocation2 + $0xe0] ss:$8 sps:$4 sm:$0xff]  }
  0x2e   :  { %718 = vmatprep.subr.bf16.mxu0 %v1361_v24  ;;  %791 = vmatprep.subr.bf16.mxu1 %v1364_v25  ;;  %v1400_v54 = vld [vmem:[#allocation2 + $0x1e4] ss:$8 sps:$4 sm:$0xff]   ;;  %v1398_v56 = vld [vmem:[#allocation2 + $0x1e0] ss:$8 sps:$4 sm:$0xff]   ;;  %v1403_v57 = vld [vmem:[#allocation2 + $0xd4] ss:$8 sps:$4 sm:$0xff]  }
  0x2f   :  { %v1406_v58 = vld [vmem:[#allocation2 + $0x1d4] ss:$8 sps:$4 sm:$0xff]   ;;  %v1401_v59 = vld [vmem:[#allocation2 + $0xd0] ss:$8 sps:$4 sm:$0xff]   ;;  %v1409_v61 = vld [vmem:[#allocation2 + $0xc4] ss:$8 sps:$4 sm:$0xff]  }
  0x30   :  { %v1404_v60 = vld [vmem:[#allocation2 + $0x1d0] ss:$8 sps:$4 sm:$0xff]   ;;  %v1412_v62 = vld [vmem:[#allocation2 + $0x1c4] ss:$8 sps:$4 sm:$0xff]   ;;  %v1407_v63 = vld [vmem:[#allocation2 + $0xc0] ss:$8 sps:$4 sm:$0xff]  }
  0x31   :  { %719 = vmatpush1.bf16.msra.mxu0 %v1359_v27  ;;  %792 = vmatpush1.bf16.msra.mxu1 %v1362_v28  ;;  %v1415_v1 = vld [vmem:[#allocation2 + $0xb4] ss:$8 sps:$4 sm:$0xff]   ;;  %v1413_v3 = vld [vmem:[#allocation2 + $0xb0] ss:$8 sps:$4 sm:$0xff]   ;;  %v1421_v5 = vld [vmem:[#allocation2 + $0xa4] ss:$8 sps:$4 sm:$0xff]  }
  0x32   :  { %720 = vmatprep.subr.bf16.mxu0 %v1367_v30  ;;  %793 = vmatprep.subr.bf16.mxu1 %v1370_v31  ;;  %v1418_v2 = vld [vmem:[#allocation2 + $0x1b4] ss:$8 sps:$4 sm:$0xff]   ;;  %v1416_v4 = vld [vmem:[#allocation2 + $0x1b0] ss:$8 sps:$4 sm:$0xff]   ;;  %v1424_v6 = vld [vmem:[#allocation2 + $0x1a4] ss:$8 sps:$4 sm:$0xff]  }
  0x33   :  { %1145 = vmatmul.mubr.msk.bf16.gmra.mxu0 %vm110_vm0, %v63_v29  ;;  %1149 = vmatmul.mubr.msk.bf16.gmra.mxu1 %vm110_vm0, %v63_v29  ;;  %v1419_v7 = vld [vmem:[#allocation2 + $0xa0] ss:$8 sps:$4 sm:$0xff]   ;;  %v1427_v9 = vld [vmem:[#allocation2 + $0x94] ss:$8 sps:$4 sm:$0xff]   ;;  %v1425_v11 = vld [vmem:[#allocation2 + $0x90] ss:$8 sps:$4 sm:$0xff]  }
  0x34   :  { %185 = vmatprep.mubr.bf16.mxu0 %v1525_v0  ;;  %258 = vmatprep.mubr.bf16.mxu1 %v1525_v0  ;;  %v1410_v0 = vld [vmem:[#allocation2 + $0x1c0] ss:$8 sps:$4 sm:$0xff]   ;;  %v1430_v10 = vld [vmem:[#allocation2 + $0x194] ss:$8 sps:$4 sm:$0xff]   ;;  %v1428_v12 = vld [vmem:[#allocation2 + $0x190] ss:$8 sps:$4 sm:$0xff]  }
  0x35   :  { %721 = vmatpush1.bf16.msra.mxu0 %v1365_v33  ;;  %794 = vmatpush1.bf16.msra.mxu1 %v1368_v34  ;;  %v1422_v8 = vld [vmem:[#allocation2 + $0x1a0] ss:$8 sps:$4 sm:$0xff]   ;;  %v1433_v13 = vld [vmem:[#allocation2 + $0x84] ss:$8 sps:$4 sm:$0xff]   ;;  %v1437_v17 = vld [vmem:[#allocation5 + $0x78] sm:$0xff]   ;;  %v1618_v19 = vshrl.u32 %v70_v18, 7 }
  0x36   :  { %722 = vmatprep.subr.bf16.mxu0 %v1373_v35  ;;  %795 = vmatprep.subr.bf16.mxu1 %v1376_v36  ;;  %v1436_v14 = vld [vmem:[#allocation2 + $0x184] ss:$8 sps:$4 sm:$0xff]   ;;  %v1431_v15 = vld [vmem:[#allocation2 + $0x80] ss:$8 sps:$4 sm:$0xff]  }
  0x37   :  { %v1434_v16 = vld [vmem:[#allocation2 + $0x180] ss:$8 sps:$4 sm:$0xff]   ;;  %v76_v20 = vsub.s32 1, %v1618_v19  ;;  %v84_v21 = vsub.s32 3, %v1618_v19  ;;  %v72_v22 = vsub.s32 0, %v1618_v19  ;;  %v80_v23 = vsub.s32 2, %v1618_v19 }
  0x38   :  { %v50_v24 = vld [vmem:[%s1711_s4] sm:$0xf] }
  0x39   :  { %723 = vmatpush1.bf16.msra.mxu0 %v1371_v38  ;;  %796 = vmatpush1.bf16.msra.mxu1 %v1374_v39  ;;  %v1629_v27 = vrot.slane %v50_v24, %v76_v20  ;;  %v1631_v28 = vrot.slane %v50_v24, %v84_v21  ;;  %v1635_v29 = vrot.slane %v50_v24, %v72_v22 }
  0x3a   :  { %724 = vmatprep.subr.bf16.mxu0 %v1379_v41  ;;  %797 = vmatprep.subr.bf16.mxu1 %v1382_v42  ;;  %v1637_v30 = vrot.slane %v50_v24, %v80_v23 }
  0x3b   :  { %1146 = vmatmul.mubr.msk.bf16.gmra.mxu0 %vm110_vm0, %v64_v40  ;;  %1150 = vmatmul.mubr.msk.bf16.gmra.mxu1 %vm110_vm0, %v64_v40 }
  0x3d   :  { %725 = vmatpush1.bf16.msra.mxu0 %v1377_v43  ;;  %798 = vmatpush1.bf16.msra.mxu1 %v1380_v44 }
  0x3e   :  { %726 = vmatprep.subr.bf16.mxu0 %v1385_v45  ;;  %799 = vmatprep.subr.bf16.mxu1 %v1388_v46 }
  0x41   :  { %727 = vmatpush1.bf16.msra.mxu0 %v1383_v47  ;;  %800 = vmatpush1.bf16.msra.mxu1 %v1386_v48 }
  0x42   :  { %728 = vmatprep.subr.bf16.mxu0 %v1391_v49  ;;  %801 = vmatprep.subr.bf16.mxu1 %v1394_v50 }
  0x45   :  { %729 = vmatpush2.bf16.msra.mxu0 %v1389_v51  ;;  %802 = vmatpush2.bf16.msra.mxu1 %v1392_v52 }
  0x46   :  { %730 = vmatprep.subr.bf16.mxu0 %v1397_v53  ;;  %803 = vmatprep.subr.bf16.mxu1 %v1400_v54 }
  0x49   :  { %731 = vmatpush2.bf16.msra.mxu0 %v1395_v55  ;;  %804 = vmatpush2.bf16.msra.mxu1 %v1398_v56 }
  0x4a   :  { %732 = vmatprep.subr.bf16.mxu0 %v1403_v57  ;;  %805 = vmatprep.subr.bf16.mxu1 %v1406_v58 }
  0x4d   :  { %733 = vmatpush2.bf16.msra.mxu0 %v1401_v59  ;;  %806 = vmatpush2.bf16.msra.mxu1 %v1404_v60  ;;  %v1438_v59 = vld [vmem:[#allocation5 + $0x38] sm:$0xff]  }
  0x4e   :  { %734 = vmatprep.subr.bf16.mxu0 %v1409_v61  ;;  %807 = vmatprep.subr.bf16.mxu1 %v1412_v62 }
  0x51   :  { %735 = vmatpush2.bf16.msra.mxu0 %v1407_v63  ;;  %808 = vmatpush2.bf16.msra.mxu1 %v1410_v0 }
  0x52   :  { %736 = vmatprep.subr.bf16.mxu0 %v1415_v1  ;;  %809 = vmatprep.subr.bf16.mxu1 %v1418_v2  ;;  %v1439_v1 = vld [vmem:[#allocation5 + $0x70] sm:$0xff]  }
  0x55   :  { %737 = vmatpush2.bf16.msra.mxu0 %v1413_v3  ;;  %810 = vmatpush2.bf16.msra.mxu1 %v1416_v4 }
  0x56   :  { %738 = vmatprep.subr.bf16.mxu0 %v1421_v5  ;;  %811 = vmatprep.subr.bf16.mxu1 %v1424_v6 }
  0x59   :  { %739 = vmatpush2.bf16.msra.mxu0 %v1419_v7  ;;  %812 = vmatpush2.bf16.msra.mxu1 %v1422_v8 }
  0x5a   :  { %740 = vmatprep.subr.bf16.mxu0 %v1427_v9  ;;  %813 = vmatprep.subr.bf16.mxu1 %v1430_v10 }
  0x5d   :  { %741 = vmatpush2.bf16.msra.mxu0 %v1425_v11  ;;  %814 = vmatpush2.bf16.msra.mxu1 %v1428_v12  ;;  %v1440_v11 = vld [vmem:[#allocation5 + $0x30] sm:$0xff]  }
  0x5e   :  { %742 = vmatprep.subr.bf16.mxu0 %v1433_v13  ;;  %815 = vmatprep.subr.bf16.mxu1 %v1436_v14 }
  0x61   :  { %743 = vmatpush2.bf16.msra.mxu0 %v1431_v15  ;;  %816 = vmatpush2.bf16.msra.mxu1 %v1434_v16  ;;  %v1441_v16 = vld [vmem:[#allocation5 + $0x68] sm:$0xff]  }
  0x62   :  { %1271 = vmatprep.subr.bf16.mxu0 %v1437_v17  ;;  %1311 = vmatprep.subr.bf16.mxu1 %v1437_v17 }
  0xe3   :  { %v157_v25 = vpop.f32.mrf.mxu0  ;;  %v230_v26 = vpop.f32.mrf.mxu1 }
  0xe4   :  { %v158_v39 = vadd.f32 %v157_v25, %v1635_v29  ;;  %v231_v40 = vadd.f32 %v230_v26, %v1637_v30 }
  0xe5   :  { %v159_v31 = vpop.f32.mrf.mxu0  ;;  %v232_v32 = vpop.f32.mrf.mxu1 }
  0xe6   :  { %v160_v35 = vadd.f32 %v159_v31, %v1629_v27  ;;  %v233_v36 = vadd.f32 %v232_v32, %v1631_v28  ;;  %v269_v53 = vmax.f32 %v158_v39, 0.0  ;;  %v271_v54 = vmax.f32 %v231_v40, 0.0  ;;  %v1443_v40 = vld [vmem:[#allocation5 + $0x60] sm:$0xff]  }
  0xe7   :  { %v161_v33 = vpop.f32.mrf.mxu0  ;;  %v234_v34 = vpop.f32.mrf.mxu1 }
  0xe8   :  { %v162_v37 = vadd.f32 %v161_v33, %v1635_v29  ;;  %v235_v38 = vadd.f32 %v234_v34, %v1637_v30  ;;  %v270_v49 = vmax.f32 %v160_v35, 0.0  ;;  %v272_v50 = vmax.f32 %v233_v36, 0.0  ;;  %v1442_v34 = vld [vmem:[#allocation5 + $0x28] sm:$0xff]  }
  0xe9   :  { %v163_v41 = vpop.f32.mrf.mxu0  ;;  %v236_v42 = vpop.f32.mrf.mxu1 }
  0xea   :  { %v164_v43 = vadd.f32 %v163_v41, %v1629_v27  ;;  %v237_v44 = vadd.f32 %v236_v42, %v1631_v28  ;;  %v273_v45 = vmax.f32 %v162_v37, 0.0  ;;  %v275_v46 = vmax.f32 %v235_v38, 0.0 }
  0xeb   :  { %v167_v47 = vpop.f32.mrf.mxu0  ;;  %v240_v48 = vpop.f32.mrf.mxu1 }
  0xec   :  { %v274_v51 = vmax.f32 %v164_v43, 0.0  ;;  %v276_v52 = vmax.f32 %v237_v44, 0.0  ;;  %v301_v60 = vpack.c.bf16 %v273_v45, %v269_v53  ;;  %v303_v61 = vpack.c.bf16 %v275_v46, %v271_v54 }
  0xed   :  { %v169_v55 = vpop.f32.mrf.mxu0  ;;  %v242_v56 = vpop.f32.mrf.mxu1  ;;  %v168_v5 = vadd.f32 %v167_v47, %v1635_v29  ;;  %v241_v6 = vadd.f32 %v240_v48, %v1637_v30 }
  0xee   :  { %v302_v57 = vpack.c.bf16 %v274_v51, %v270_v49  ;;  %v304_v58 = vpack.c.bf16 %v276_v52, %v272_v50  ;;  %v170_v62 = vadd.f32 %v169_v55, %v1629_v27  ;;  %v243_v2 = vadd.f32 %v242_v56, %v1631_v28  ;;  %v1444_v50 = vld [vmem:[#allocation5 + $0x20] sm:$0xff]  }
  0xef   :  { %v171_v63 = vpop.f32.mrf.mxu0  ;;  %v244_v0 = vpop.f32.mrf.mxu1  ;;  %v277_v24 = vmax.f32 %v168_v5, 0.0  ;;  %v279_v25 = vmax.f32 %v241_v6, 0.0 }
  0xf0   :  { %v172_v3 = vadd.f32 %v171_v63, %v1635_v29  ;;  %v245_v4 = vadd.f32 %v244_v0, %v1637_v30  ;;  %744 = vmatprep.mubr.bf16.mxu0 %v302_v57  ;;  %817 = vmatprep.mubr.bf16.mxu1 %v304_v58  ;;  %v278_v17 = vmax.f32 %v170_v62, 0.0  ;;  %v280_v18 = vmax.f32 %v243_v2, 0.0 }
  0xf1   :  { %v173_v7 = vpop.f32.mrf.mxu0  ;;  %v246_v8 = vpop.f32.mrf.mxu1  ;;  %745 = vmatmul.mubr.bf16.vlgmr.msra.gmra.mxu0 %v301_v60  ;;  %818 = vmatmul.mubr.bf16.vlgmr.msra.gmra.mxu1 %v303_v61 }
  0xf2   :  { %v174_v9 = vadd.f32 %v173_v7, %v1629_v27  ;;  %v247_v10 = vadd.f32 %v246_v8, %v1631_v28  ;;  %1272 = vmatpush3.bf16.msra.mxu0 %v1438_v59  ;;  %1319 = vmatpush3.bf16.msra.mxu1 %v1438_v59  ;;  %v281_v12 = vmax.f32 %v172_v3, 0.0  ;;  %v283_v13 = vmax.f32 %v245_v4, 0.0 }
  0xf3   :  { %v177_v14 = vpop.f32.mrf.mxu0  ;;  %v250_v15 = vpop.f32.mrf.mxu1  ;;  %1273 = vmatprep.subr.bf16.mxu0 %v1439_v1  ;;  %1312 = vmatprep.subr.bf16.mxu1 %v1439_v1 }
  0xf4   :  { %v282_v21 = vmax.f32 %v174_v9, 0.0  ;;  %v284_v23 = vmax.f32 %v247_v10, 0.0  ;;  %v305_v35 = vpack.c.bf16 %v281_v12, %v277_v24  ;;  %v307_v36 = vpack.c.bf16 %v283_v13, %v279_v25 }
  0xf5   :  { %v179_v26 = vpop.f32.mrf.mxu0  ;;  %v252_v31 = vpop.f32.mrf.mxu1  ;;  %v178_v44 = vadd.f32 %v177_v14, %v1635_v29  ;;  %v251_v45 = vadd.f32 %v250_v15, %v1637_v30 }
  0xf6   :  { %v306_v32 = vpack.c.bf16 %v282_v21, %v278_v17  ;;  %v308_v33 = vpack.c.bf16 %v284_v23, %v280_v18  ;;  %1274 = vmatpush3.bf16.msra.mxu0 %v1440_v11  ;;  %v180_v37 = vadd.f32 %v179_v26, %v1629_v27  ;;  %1320 = vmatpush3.bf16.msra.mxu1 %v1440_v11 }
  0xf7   :  { %v181_v38 = vpop.f32.mrf.mxu0  ;;  %v254_v39 = vpop.f32.mrf.mxu1  ;;  %1275 = vmatprep.subr.bf16.mxu0 %v1441_v16  ;;  %v253_v41 = vadd.f32 %v252_v31, %v1631_v28  ;;  %1313 = vmatprep.subr.bf16.mxu1 %v1441_v16  ;;  %v285_v59 = vmax.f32 %v178_v44, 0.0  ;;  %v287_v60 = vmax.f32 %v251_v45, 0.0 }
  0xf8   :  { %v182_v42 = vadd.f32 %v181_v38, %v1635_v29  ;;  %v255_v43 = vadd.f32 %v254_v39, %v1637_v30  ;;  %754 = vmatprep.mubr.bf16.mxu0 %v306_v32  ;;  %827 = vmatprep.mubr.bf16.mxu1 %v308_v33  ;;  %v286_v55 = vmax.f32 %v180_v37, 0.0  ;;  %v1445_v32 = vld [vmem:[#allocation5 + $0x58] sm:$0xff]   ;;  %v1448_v33 = vld [vmem:[#allocation5 + $0x10] sm:$0xff]   ;;  %v1452_v37 = vld [vmem:[#allocation5] sm:$0xff]  }
  0xf9   :  { %v183_v46 = vpop.f32.mrf.mxu0  ;;  %v256_v47 = vpop.f32.mrf.mxu1  ;;  %755 = vmatmul.mubr.bf16.gmra.mxu0 %v305_v35  ;;  %828 = vmatmul.mubr.bf16.gmra.mxu1 %v307_v36  ;;  %v288_v56 = vmax.f32 %v253_v41, 0.0  ;;  %v1450_v35 = vld [vmem:[#allocation5 + $0x8] sm:$0xff]   ;;  %v1451_v36 = vld [vmem:[#allocation5 + $0x40] sm:$0xff]  }
  0xfa   :  { %v184_v48 = vadd.f32 %v183_v46, %v1629_v27  ;;  %v257_v49 = vadd.f32 %v256_v47, %v1631_v28  ;;  %1276 = vmatpush3.bf16.msra.mxu0 %v1442_v34  ;;  %v289_v51 = vmax.f32 %v182_v42, 0.0  ;;  %v291_v52 = vmax.f32 %v255_v43, 0.0  ;;  %1321 = vmatpush3.bf16.msra.mxu1 %v1442_v34  ;;  %v1449_v34 = vld [vmem:[#allocation5 + $0x48] sm:$0xff]   ;;  %v51_v38 = vld [vmem:[%s1711_s4 + $0x4] sm:$0x3] }
  0xfb   :  { %v187_v53 = vpop.f32.mrf.mxu0  ;;  %v260_v54 = vpop.f32.mrf.mxu1  ;;  %1277 = vmatprep.subr.bf16.mxu0 %v1443_v40  ;;  %1314 = vmatprep.subr.bf16.mxu1 %v1443_v40  ;;  %v1676_v39 = vrot.slane %v51_v38, %v76_v20  ;;  %v1680_v40 = vrot.slane %v51_v38, %v72_v22 }
  0xfc   :  { %v290_v57 = vmax.f32 %v184_v48, 0.0  ;;  %v292_v58 = vmax.f32 %v257_v49, 0.0  ;;  %v309_v1 = vpack.c.bf16 %v289_v51, %v285_v59  ;;  %v311_v2 = vpack.c.bf16 %v291_v52, %v287_v60 }
  0xfd   :  { %v189_v61 = vpop.f32.mrf.mxu0  ;;  %v262_v62 = vpop.f32.mrf.mxu1  ;;  %v188_v9 = vadd.f32 %v187_v53, %v1635_v29  ;;  %v261_v10 = vadd.f32 %v260_v54, %v1637_v30 }
  0xfe   :  { %v310_v63 = vpack.c.bf16 %v290_v57, %v286_v55  ;;  %v312_v0 = vpack.c.bf16 %v292_v58, %v288_v56  ;;  %1278 = vmatpush3.bf16.msra.mxu0 %v1444_v50  ;;  %v190_v3 = vadd.f32 %v189_v61, %v1629_v27  ;;  %1322 = vmatpush3.bf16.msra.mxu1 %v1444_v50 }
  0xff   :  { %v191_v4 = vpop.f32.mrf.mxu0  ;;  %v264_v5 = vpop.f32.mrf.mxu1  ;;  %v263_v6 = vadd.f32 %v262_v62, %v1631_v28  ;;  %v293_v24 = vmax.f32 %v188_v9, 0.0  ;;  %v295_v25 = vmax.f32 %v261_v10, 0.0  ;;  %1279 = vmatprep.subr.bf16.mxu0 %v1445_v32  ;;  %1315 = vmatprep.subr.bf16.mxu1 %v1445_v32 }
 0x100   :  { %v192_v7 = vadd.f32 %v191_v4, %v1635_v29  ;;  %v265_v8 = vadd.f32 %v264_v5, %v1637_v30  ;;  %764 = vmatprep.mubr.bf16.mxu0 %v310_v63  ;;  %837 = vmatprep.mubr.bf16.mxu1 %v312_v0  ;;  %v294_v17 = vmax.f32 %v190_v3, 0.0 }
 0x101   :  { %v193_v11 = vpop.f32.mrf.mxu0  ;;  %v266_v12 = vpop.f32.mrf.mxu1  ;;  %765 = vmatmul.mubr.bf16.gmra.mxu0 %v309_v1  ;;  %838 = vmatmul.mubr.bf16.gmra.mxu1 %v311_v2  ;;  %v296_v18 = vmax.f32 %v263_v6, 0.0 }
 0x102   :  { %v194_v13 = vadd.f32 %v193_v11, %v1629_v27  ;;  %v267_v14 = vadd.f32 %v266_v12, %v1631_v28  ;;  %v297_v15 = vmax.f32 %v192_v7, 0.0  ;;  %v299_v16 = vmax.f32 %v265_v8, 0.0  ;;  %v1446_v27 = vld [vmem:[#allocation5 + $0x18] sm:$0xff]   ;;  %v1447_v28 = vld [vmem:[#allocation5 + $0x50] sm:$0xff]  }
 0x103   :  { %1280 = vmatpush3.bf16.msra.mxu0 %v1446_v27  ;;  %1323 = vmatpush3.bf16.msra.mxu1 %v1446_v27 }
 0x104   :  { %v298_v21 = vmax.f32 %v194_v13, 0.0  ;;  %v300_v23 = vmax.f32 %v267_v14, 0.0  ;;  %v313_v31 = vpack.c.bf16 %v297_v15, %v293_v24  ;;  %v315_v30 = vpack.c.bf16 %v299_v16, %v295_v25  ;;  %1281 = vmatprep.subr.bf16.mxu0 %v1447_v28  ;;  %1316 = vmatprep.subr.bf16.mxu1 %v1447_v28 }
 0x106   :  { %v314_v26 = vpack.c.bf16 %v298_v21, %v294_v17  ;;  %v316_v29 = vpack.c.bf16 %v300_v23, %v296_v18 }
 0x107   :  { %1282 = vmatpush3.bf16.msra.mxu0 %v1448_v33  ;;  %1324 = vmatpush3.bf16.msra.mxu1 %v1448_v33 }
 0x108   :  { %774 = vmatprep.mubr.bf16.mxu0 %v314_v26  ;;  %847 = vmatprep.mubr.bf16.mxu1 %v316_v29 }
 0x109   :  { %775 = vmatmul.mubr.bf16.gmra.mxu0 %v313_v31  ;;  %848 = vmatmul.mubr.bf16.gmra.mxu1 %v315_v30 }
 0x10a   :  { %1283 = vmatprep.subr.bf16.mxu0 %v1449_v34  ;;  %1317 = vmatprep.subr.bf16.mxu1 %v1449_v34 }
 0x10b   :  { %1284 = vmatpush3.bf16.msra.mxu0 %v1450_v35  ;;  %1325 = vmatpush3.bf16.msra.mxu1 %v1450_v35 }
 0x10c   :  { %1285 = vmatprep.subr.bf16.mxu0 %v1451_v36  ;;  %1318 = vmatprep.subr.bf16.mxu1 %v1451_v36 }
 0x10f   :  { %1286 = vmatpush3.bf16.msra.mxu0 %v1452_v37  ;;  %1326 = vmatpush3.bf16.msra.mxu1 %v1452_v37 }
 0x1b1   :  { %v746_v41 = vpop.f32.mrf.mxu0  ;;  %v819_v42 = vpop.f32.mrf.mxu1 }
 0x1b2   :  { %v747_v46 = vadd.f32 %v746_v41, %v1680_v40 }
 0x1b3   :  { %v748_v43 = vpop.f32.mrf.mxu0  ;;  %v821_v44 = vpop.f32.mrf.mxu1 }
 0x1b4   :  { %v749_v45 = vadd.f32 %v748_v43, %v1676_v39  ;;  %v820_v22 = vadd.f32 %v819_v42, %v747_v46 }
 0x1b5   :  { %v750_v47 = vpop.f32.mrf.mxu0  ;;  %v823_v48 = vpop.f32.mrf.mxu1 }
 0x1b6   :  { %v751_v49 = vadd.f32 %v750_v47, %v1680_v40  ;;  %v822_v20 = vadd.f32 %v821_v44, %v749_v45  ;;  %v858_v62 = vmax.f32 %v820_v22, 0.0 }
 0x1b7   :  { %v752_v50 = vpop.f32.mrf.mxu0  ;;  %v825_v51 = vpop.f32.mrf.mxu1 }
 0x1b8   :  { %v824_v52 = vadd.f32 %v823_v48, %v751_v49  ;;  %v753_v19 = vadd.f32 %v752_v50, %v1676_v39  ;;  %v859_v59 = vmax.f32 %v822_v20, 0.0 }
 0x1b9   :  { %v756_v53 = vpop.f32.mrf.mxu0  ;;  %v829_v54 = vpop.f32.mrf.mxu1 }
 0x1ba   :  { %v826_v55 = vadd.f32 %v825_v51, %v753_v19  ;;  %v860_v56 = vmax.f32 %v824_v52, 0.0  ;;  %v757_v63 = vadd.f32 %v756_v53, %v1680_v40 }
 0x1bb   :  { %v758_v57 = vpop.f32.mrf.mxu0  ;;  %v831_v58 = vpop.f32.mrf.mxu1 }
 0x1bc   :  { %v861_v60 = vmax.f32 %v826_v55, 0.0  ;;  %v759_v61 = vadd.f32 %v758_v57, %v1676_v39  ;;  %v874_v4 = vpack.c.bf16 %v860_v56, %v858_v62  ;;  %v830_v10 = vadd.f32 %v829_v54, %v757_v63 }
 0x1bd   :  { %v760_v0 = vpop.f32.mrf.mxu0  ;;  %v833_v1 = vpop.f32.mrf.mxu1 }
 0x1be   :  { %v875_v2 = vpack.c.bf16 %v861_v60, %v859_v59  ;;  %v761_v3 = vadd.f32 %v760_v0, %v1680_v40  ;;  %v832_v7 = vadd.f32 %v831_v58, %v759_v61  ;;  %v862_v23 = vmax.f32 %v830_v10, 0.0 }
 0x1bf   :  { %v762_v5 = vpop.f32.mrf.mxu0  ;;  %v835_v6 = vpop.f32.mrf.mxu1 }
 0x1c0   :  { %v834_v8 = vadd.f32 %v833_v1, %v761_v3  ;;  %v763_v9 = vadd.f32 %v762_v5, %v1676_v39  ;;  %1048 = vmatprep.mubr.bf16.mxu0 %v875_v2  ;;  %v863_v17 = vmax.f32 %v832_v7, 0.0 }
 0x1c1   :  { %v766_v11 = vpop.f32.mrf.mxu0  ;;  %v839_v12 = vpop.f32.mrf.mxu1  ;;  %1049 = vmatmul.mubr.bf16.vlgmr.msra.gmra.mxu0 %v874_v4 }
 0x1c2   :  { %v836_v13 = vadd.f32 %v835_v6, %v763_v9  ;;  %v864_v14 = vmax.f32 %v834_v8, 0.0  ;;  %v767_v24 = vadd.f32 %v766_v11, %v1680_v40 }
 0x1c3   :  { %v768_v15 = vpop.f32.mrf.mxu0  ;;  %v841_v16 = vpop.f32.mrf.mxu1 }
 0x1c4   :  { %v865_v18 = vmax.f32 %v836_v13, 0.0  ;;  %v769_v21 = vadd.f32 %v768_v15, %v1676_v39  ;;  %v876_v30 = vpack.c.bf16 %v864_v14, %v862_v23  ;;  %v840_v35 = vadd.f32 %v839_v12, %v767_v24 }
 0x1c5   :  { %v770_v25 = vpop.f32.mrf.mxu0  ;;  %v843_v26 = vpop.f32.mrf.mxu1 }
 0x1c6   :  { %v877_v29 = vpack.c.bf16 %v865_v18, %v863_v17  ;;  %v771_v31 = vadd.f32 %v770_v25, %v1680_v40  ;;  %v842_v28 = vadd.f32 %v841_v16, %v769_v21  ;;  %v866_v47 = vmax.f32 %v840_v35, 0.0 }
 0x1c7   :  { %v772_v32 = vpop.f32.mrf.mxu0  ;;  %v845_v27 = vpop.f32.mrf.mxu1 }
 0x1c8   :  { %v844_v33 = vadd.f32 %v843_v26, %v771_v31  ;;  %v773_v34 = vadd.f32 %v772_v32, %v1676_v39  ;;  %1056 = vmatprep.mubr.bf16.mxu0 %v877_v29  ;;  %v867_v44 = vmax.f32 %v842_v28, 0.0 }
 0x1c9   :  { %v776_v36 = vpop.f32.mrf.mxu0  ;;  %v849_v37 = vpop.f32.mrf.mxu1  ;;  %1057 = vmatmul.mubr.bf16.gmra.mxu0 %v876_v30 }
 0x1ca   :  { %v846_v38 = vadd.f32 %v845_v27, %v773_v34  ;;  %v868_v41 = vmax.f32 %v844_v33, 0.0  ;;  %v777_v48 = vadd.f32 %v776_v36, %v1680_v40 }
 0x1cb   :  { %v778_v42 = vpop.f32.mrf.mxu0  ;;  %v851_v43 = vpop.f32.mrf.mxu1 }
 0x1cc   :  { %v869_v45 = vmax.f32 %v846_v38, 0.0  ;;  %v779_v46 = vadd.f32 %v778_v42, %v1676_v39  ;;  %v878_v52 = vpack.c.bf16 %v868_v41, %v866_v47  ;;  %v850_v55 = vadd.f32 %v849_v37, %v777_v48 }
 0x1cd   :  { %v780_v49 = vpop.f32.mrf.mxu0  ;;  %v853_v50 = vpop.f32.mrf.mxu1 }
 0x1ce   :  { %v879_v51 = vpack.c.bf16 %v869_v45, %v867_v44  ;;  %v781_v20 = vadd.f32 %v780_v49, %v1680_v40  ;;  %v852_v22 = vadd.f32 %v851_v43, %v779_v46  ;;  %v870_v61 = vmax.f32 %v850_v55, 0.0 }
 0x1cf   :  { %v782_v19 = vpop.f32.mrf.mxu0  ;;  %v855_v56 = vpop.f32.mrf.mxu1 }
 0x1d0   :  { %v854_v53 = vadd.f32 %v853_v50, %v781_v20  ;;  %v783_v54 = vadd.f32 %v782_v19, %v1676_v39  ;;  %1064 = vmatprep.mubr.bf16.mxu1 %v879_v51  ;;  %v871_v59 = vmax.f32 %v852_v22, 0.0  ;;  %v1215_v39 = vld [vmem:[%s1711_s4 + $0x6] ss:$0 sm:$0xff]  ;;  %s1526_s4 = smov [#allocation7]  }
 0x1d1   :  { %1065 = vmatmul.mubr.bf16.vlgmr.msra.gmra.mxu1 %v878_v52  ;;  %s1126_s9 = sshll.u32 %s1526_s4, 4  ;;  %s1127_s9 = int_to_ptr.vmem [resolvable:$true] %s1126_s9 }
 0x1d2   :  { %v856_v57 = vadd.f32 %v855_v56, %v783_v54  ;;  %v872_v58 = vmax.f32 %v854_v53, 0.0  ;;  %s1493_s10 = scalar_lea.vmem %s1127_s9, 512  ;;  %p1498_p11 = scmp.lt.s32.totalorder %s1127_s9, %s1127_s9 }
 0x1d3   :  { %p1494_p10 = scmp.ne.s32.totalorder %s1127_s9, %s1493_s10  ;;  %p1499_p12 = scmp.lt.s32.totalorder %s1493_s10, %s1493_s10 }
 0x1d4   :  { %v873_v60 = vmax.f32 %v856_v57, 0.0  ;;  %v880_v63 = vpack.c.bf16 %v872_v58, %v870_v61 }
 0x1d5   :  { %p1500_p13 = por %p1499_p12, %p1498_p11 }
 0x1d6   :  { %v881_v62 = vpack.c.bf16 %v873_v60, %v871_v59 }
 0x1d7   :  { %p1501_p0 = pnand %p1500_p13, %p1494_p10 }
 0x1d8   :  { %1072 = vmatprep.mubr.bf16.mxu1 %v881_v62 }
 0x1d9   :  { %1073 = vmatmul.mubr.bf16.gmra.mxu1 %v880_v63 }
 0x281   :  { %v1287_v40 = vpop.f32.mrf.mxu0 }
 0x283   :  { %v1288_v0 = vpop.f32.mrf.mxu0 }
 0x284   :  { %v1289_v2 = vadd.f32 %v1288_v0, %v1287_v40 }
 0x285   :  { %v1290_v1 = vpop.f32.mrf.mxu0 }
 0x286   :  { %v1051_v6 = vadd.f32 %v1289_v2, %v1215_v39 }
 0x287   :  { %v1291_v3 = vpop.f32.mrf.mxu0 }
 0x288   :  { %v1292_v4 = vadd.f32 %v1291_v3, %v1290_v1 }
 0x289   :  { %v1293_v5 = vpop.f32.mrf.mxu0 }
 0x28a   :  { %v1054_v7 = vadd.f32 %v1292_v4, %v1215_v39 }
 0x28b   :  { %v1294_v8 = vpop.f32.mrf.mxu0 }
 0x28c   :  { %v1251_v9 = vpack.c.bf16 %v1054_v7, %v1051_v6  ;;  %v1295_v11 = vadd.f32 %v1294_v8, %v1293_v5 }
 0x28d   :  { %v1296_v10 = vpop.f32.mrf.mxu0 }
 0x28e   :  { %1252 = vst [vmem:[#allocation7] sm:$0xff] %v1251_v9   ;;  %v1059_v15 = vadd.f32 %v1295_v11, %v1215_v39 }
 0x28f   :  { %v1297_v12 = vpop.f32.mrf.mxu0 }
 0x290   :  { %v1298_v13 = vadd.f32 %v1297_v12, %v1296_v10 }
 0x291   :  { %v1299_v14 = vpop.f32.mrf.mxu1 }
 0x292   :  { %v1062_v16 = vadd.f32 %v1298_v13, %v1215_v39 }
 0x293   :  { %v1300_v17 = vpop.f32.mrf.mxu1 }
 0x294   :  { %v1256_v18 = vpack.c.bf16 %v1062_v16, %v1059_v15  ;;  %v1301_v23 = vadd.f32 %v1300_v17, %v1299_v14 }
 0x295   :  { %v1302_v21 = vpop.f32.mrf.mxu1 }
 0x296   :  { %1268 = vst [vmem:[#allocation7 + $0x8] sm:$0xff] %v1256_v18   ;;  %v1067_v29 = vadd.f32 %v1301_v23, %v1215_v39 }
 0x297   :  { %v1303_v24 = vpop.f32.mrf.mxu1 }
 0x298   :  { %v1304_v25 = vadd.f32 %v1303_v24, %v1302_v21 }
 0x299   :  { %v1305_v26 = vpop.f32.mrf.mxu1 }
 0x29a   :  { %v1070_v31 = vadd.f32 %v1304_v25, %v1215_v39 }
 0x29b   :  { %v1306_v30 = vpop.f32.mrf.mxu1 }
 0x29c   :  { %v1261_v32 = vpack.c.bf16 %v1070_v31, %v1067_v29  ;;  %v1307_v28 = vadd.f32 %v1306_v30, %v1305_v26 }
 0x29d   :  { %v1308_v27 = vpop.f32.mrf.mxu1 }
 0x29e   :  { %1269 = vst [vmem:[#allocation7 + $0x10] sm:$0xff] %v1261_v32   ;;  %v1075_v35 = vadd.f32 %v1307_v28, %v1215_v39 }
 0x29f   :  { %v1309_v33 = vpop.f32.mrf.mxu1 }
 0x2a0   :  { %v1310_v34 = vadd.f32 %v1309_v33, %v1308_v27 }
 0x2a2   :  { %v1078_v36 = vadd.f32 %v1310_v34, %v1215_v39 }
 0x2a4   :  { %v1266_v37 = vpack.c.bf16 %v1078_v36, %v1075_v35 }
 0x2a6   :  { %1270 = vst [vmem:[#allocation7 + $0x18] sm:$0xff] %v1266_v37  }
 0x2a7   :  { %1504 = shalt.err (!%p1501_p0)
}
 0x2a8   :  { %1132 = dma.vmem_to_hbm [thread:$0]  %s1127_s9, 512, %s1712_s5, [#allocation4], %s1523_s28, %s1523_s28, %s1524_s29  }
 0x2a9   :  { %1517 = dma.done.wait [#allocation4], 512  }
 0x2aa   :  { %1518 = vsyncadd [#allocation4], 4294966784 }
 0x2ab   :  { %1136 = vsyncpa [#allocation3], 1 }
 0x2ac   :  { %1137 = vsyncpa [#allocation6], 1 }
 0x2ad   :  { %1138 = vsyncpa [#allocation4], 1 }

</bundles_post_ra>
